<compile_context>
chip_gen: v7x
topology: tpu7x:2x2x1
jax: 0.10.0
libtpu: 0.0.40
codegen_flags: <defaults>
</compile_context>

<pallas_src>
import math
import jax
import jax.numpy as jnp
from jax.experimental import pallas as pl
from jax.experimental.pallas import tpu as pltpu


DATA_DIM = 2
NZ = 2
HIDDEN = 32
IN_DIM = DATA_DIM + 1 + NZ   # 5
TB_MAX = 512                 # batch tile upper bound (MXU-aligned, multiple of 256)


def toy_generator_kernel(x_ref, t_ref, z_ref,
                         w1_ref, b1_ref, w2_ref, b2_ref,
                         w3_ref, b3_ref, w4_ref, b4_ref, out_ref):
    # x_ref: (TB, DATA_DIM), t_ref: (TB, 1), z_ref: (TB, NZ), out_ref: (TB, DATA_DIM)
    # Layer 1 without materializing the concatenated input:
    #   xin @ W1 == x @ W1[0:2] + (t/4) * W1[2:3] + z @ W1[3:5]
    w1 = w1_ref[...]                                            # (IN_DIM, HIDDEN)
    h = jnp.dot(x_ref[...], w1[0:DATA_DIM, :],
                preferred_element_type=jnp.float32)
    h = h + (t_ref[...] * 0.25) * w1[DATA_DIM:DATA_DIM + 1, :]  # (TB,1)*(1,H) bcast
    h = h + jnp.dot(z_ref[...], w1[DATA_DIM + 1:, :],
                    preferred_element_type=jnp.float32)
    h = jnp.tanh(h + b1_ref[...])
    # Layers 2, 3 (Linear + Tanh)
    h = jnp.tanh(jnp.dot(h, w2_ref[...], preferred_element_type=jnp.float32)
                 + b2_ref[...])
    h = jnp.tanh(jnp.dot(h, w3_ref[...], preferred_element_type=jnp.float32)
                 + b3_ref[...])
    # Output layer (Linear, no activation)
    out_ref[...] = (jnp.dot(h, w4_ref[...], preferred_element_type=jnp.float32)
                    + b4_ref[...])


def toy_generator_forward(x, t, latent_z, params):
    """x: (B, DATA_DIM), t: (B,), latent_z: (B, NZ) -> (B, DATA_DIM)."""
    x = x.astype(jnp.float32)
    t2 = t.astype(jnp.float32).reshape(-1, 1)     # (B, 1)
    z = latent_z.astype(jnp.float32)

    B = x.shape[0]
    # Large tile to amortize per-step overhead; clamp for tiny batches so we
    # don't compute hundreds of padded garbage rows.
    tb = min(TB_MAX, ((B + 7) // 8) * 8)
    b_pad = pl.cdiv(B, tb) * tb
    if b_pad != B:
        pad = ((0, b_pad - B), (0, 0))
        x = jnp.pad(x, pad)
        t2 = jnp.pad(t2, pad)
        z = jnp.pad(z, pad)

    w1, b1, w2, b2, w3, b3, w4, b4 = params

    full = lambda shape: pl.BlockSpec(shape, lambda i: (0, 0))   # resident in VMEM
    row = lambda d: pl.BlockSpec((tb, d), lambda i: (i, 0))      # batch-tiled

    # Advisory cost hint for XLA's scheduler (flops, tanh count, HBM bytes).
    flops = 2 * b_pad * (IN_DIM * HIDDEN + 2 * HIDDEN * HIDDEN + HIDDEN * DATA_DIM)
    transc = 3 * b_pad * HIDDEN
    weight_bytes = 4 * (IN_DIM * HIDDEN + 2 * HIDDEN * HIDDEN + HIDDEN * DATA_DIM
                        + 3 * HIDDEN + DATA_DIM)
    io_bytes = 4 * b_pad * (IN_DIM + DATA_DIM)
    cost = pl.CostEstimate(flops=flops, transcendentals=transc,
                           bytes_accessed=weight_bytes + io_bytes)

    out = pl.pallas_call(
        toy_generator_kernel,
        out_shape=jax.ShapeDtypeStruct((b_pad, DATA_DIM), jnp.float32),
        grid=(b_pad // tb,),
        in_specs=[
            row(DATA_DIM),               # x
            row(1),                      # t (as column)
            row(NZ),                     # latent_z
            full((IN_DIM, HIDDEN)), full((1, HIDDEN)),      # W1, b1
            full((HIDDEN, HIDDEN)), full((1, HIDDEN)),      # W2, b2
            full((HIDDEN, HIDDEN)), full((1, HIDDEN)),      # W3, b3
            full((HIDDEN, DATA_DIM)), full((1, DATA_DIM)),  # W4, b4
        ],
        out_specs=row(DATA_DIM),
        compiler_params=pltpu.CompilerParams(
            dimension_semantics=("parallel",)),
        cost_estimate=cost,
    )(x, t2, z, w1, b1, w2, b2, w3, b3, w4, b4)

    return out[:B]


def init_params(key):
    """Deterministic init mimicking nn.Linear default (U[-1/sqrt(fan_in), +])."""
    def linear(key, fan_in, fan_out):
        kw, kb = jax.random.split(key)
        bound = 1.0 / math.sqrt(fan_in)
        # stored as (in, out) so the kernel computes x @ W
        w = jax.random.uniform(kw, (fan_in, fan_out), jnp.float32, -bound, bound)
        b = jax.random.uniform(kb, (1, fan_out), jnp.float32, -bound, bound)
        return w, b

    k1, k2, k3, k4 = jax.random.split(key, 4)
    w1, b1 = linear(k1, IN_DIM, HIDDEN)    # FC block 0: Linear(5, 32)
    w2, b2 = linear(k2, HIDDEN, HIDDEN)    # FC block 1: Linear(32, 32)
    w3, b3 = linear(k3, HIDDEN, HIDDEN)    # FC block 2: Linear(32, 32)
    w4, b4 = linear(k4, HIDDEN, DATA_DIM)  # out_module: Linear(32, 2)
    return (w1, b1, w2, b2, w3, b3, w4, b4)


def reference_forward(x, t, latent_z, params):
    """Pure-JAX reference for correctness checking."""
    w1, b1, w2, b2, w3, b3, w4, b4 = params
    xin = jnp.concatenate([x.astype(jnp.float32),
                           t.astype(jnp.float32)[:, None] / 4.0,
                           latent_z.astype(jnp.float32)], axis=1)
    h = jnp.tanh(xin @ w1 + b1)
    h = jnp.tanh(h @ w2 + b2)
    h = jnp.tanh(h @ w3 + b3)
    return h @ w4 + b4


if __name__ == "__main__":
    key = jax.random.PRNGKey(0)
    kp, kx, kt, kz = jax.random.split(key, 4)
    params = init_params(kp)

    # Small batch (single grid step, clamped tile).
    B_small = 8
    x_s = jax.random.normal(kx, (B_small, DATA_DIM), jnp.float32)
    t_s = jax.random.uniform(kt, (B_small,), jnp.float32, 0.0, 4.0)
    z_s = jax.random.normal(kz, (B_small, NZ), jnp.float32)
    out_s = jax.block_until_ready(toy_generator_forward(x_s, t_s, z_s, params))
    ref_s = reference_forward(x_s, t_s, z_s, params)
    assert out_s.shape == (B_small, DATA_DIM)
    assert jnp.allclose(out_s, ref_s, atol=1e-5, rtol=1e-5), "mismatch (small batch)"

    # Larger, non-multiple batch (exercises padding and a multi-step grid).
    B_big = 600
    kx2, kt2, kz2 = jax.random.split(jax.random.PRNGKey(1), 3)
    x_b = jax.random.normal(kx2, (B_big, DATA_DIM), jnp.float32)
    t_b = jax.random.uniform(kt2, (B_big,), jnp.float32, 0.0, 4.0)
    z_b = jax.random.normal(kz2, (B_big, NZ), jnp.float32)
    out_b = jax.block_until_ready(toy_generator_forward(x_b, t_b, z_b, params))
    ref_b = reference_forward(x_b, t_b, z_b, params)
    assert out_b.shape == (B_big, DATA_DIM)
    assert jnp.allclose(out_b, ref_b, atol=1e-5, rtol=1e-5), "mismatch (big batch)"

    print("KERNEL_OK")
</pallas_src>

<mosaic_0001>
module attributes {stable_mosaic.version = 11 : i64} {
  func.func @toy_generator_kernel(%arg0: i32, %arg1: memref<8x2xf32, #tpu.memory_space<vmem>>, %arg2: memref<8x1xf32, #tpu.memory_space<vmem>>, %arg3: memref<8x2xf32, #tpu.memory_space<vmem>>, %arg4: memref<5x32xf32, #tpu.memory_space<vmem>>, %arg5: memref<1x32xf32, #tpu.memory_space<vmem>>, %arg6: memref<32x32xf32, #tpu.memory_space<vmem>>, %arg7: memref<1x32xf32, #tpu.memory_space<vmem>>, %arg8: memref<32x32xf32, #tpu.memory_space<vmem>>, %arg9: memref<1x32xf32, #tpu.memory_space<vmem>>, %arg10: memref<32x2xf32, #tpu.memory_space<vmem>>, %arg11: memref<1x2xf32, #tpu.memory_space<vmem>>, %arg12: memref<8x2xf32, #tpu.memory_space<vmem>>) attributes {dimension_semantics = [#tpu.dimension_semantics<parallel>], iteration_bounds = array<i64: 1>, scalar_prefetch = 0 : i64, scratch_operands = 0 : i64, tpu.core_type = #tpu.core_type<tc>, window_params = [{transform_indices = @transform_0, window_bounds = array<i64: 8, 2>}, {transform_indices = @transform_1, window_bounds = array<i64: 8, 1>}, {transform_indices = @transform_2, window_bounds = array<i64: 8, 2>}, {pipeline_mode = #tpu.pipeline_mode<synchronous>, transform_indices = @transform_3, window_bounds = array<i64: 5, 32>}, {pipeline_mode = #tpu.pipeline_mode<synchronous>, transform_indices = @transform_4, window_bounds = array<i64: 1, 32>}, {pipeline_mode = #tpu.pipeline_mode<synchronous>, transform_indices = @transform_5, window_bounds = array<i64: 32, 32>}, {pipeline_mode = #tpu.pipeline_mode<synchronous>, transform_indices = @transform_6, window_bounds = array<i64: 1, 32>}, {pipeline_mode = #tpu.pipeline_mode<synchronous>, transform_indices = @transform_7, window_bounds = array<i64: 32, 32>}, {pipeline_mode = #tpu.pipeline_mode<synchronous>, transform_indices = @transform_8, window_bounds = array<i64: 1, 32>}, {pipeline_mode = #tpu.pipeline_mode<synchronous>, transform_indices = @transform_9, window_bounds = array<i64: 32, 2>}, {pipeline_mode = #tpu.pipeline_mode<synchronous>, transform_indices = @transform_10, window_bounds = array<i64: 1, 2>}, {transform_indices = @transform_11, window_bounds = array<i64: 8, 2>}]} {
    %c0 = arith.constant 0 : index
    %c0_0 = arith.constant 0 : index
    %0 = vector.load %arg4[%c0, %c0_0] : memref<5x32xf32, #tpu.memory_space<vmem>>, vector<5x32xf32>
    %c0_1 = arith.constant 0 : index
    %c0_2 = arith.constant 0 : index
    %1 = vector.load %arg1[%c0_1, %c0_2] : memref<8x2xf32, #tpu.memory_space<vmem>>, vector<8x2xf32>
    %2 = vector.extract_strided_slice %0 {offsets = [0, 0], sizes = [2, 32], strides = [1, 1]} : vector<5x32xf32> to vector<2x32xf32>
    %cst = arith.constant dense<0.000000e+00> : vector<8x32xf32>
    %3 = tpu.matmul %1, %2, %cst {dimension_numbers = #tpu.dot_dimension_numbers<[1], [0], [0], [1], [0, 0, 1, 1], [], []>} : vector<8x2xf32>, vector<2x32xf32>, vector<8x32xf32> -> vector<8x32xf32>
    %c0_3 = arith.constant 0 : index
    %c0_4 = arith.constant 0 : index
    %4 = vector.load %arg2[%c0_3, %c0_4] : memref<8x1xf32, #tpu.memory_space<vmem>>, vector<8x1xf32>
    %cst_5 = arith.constant 2.500000e-01 : f32
    %5 = vector.broadcast %cst_5 : f32 to vector<8x1xf32>
    %6 = arith.mulf %4, %5 : vector<8x1xf32>
    %7 = vector.extract_strided_slice %0 {offsets = [2, 0], sizes = [1, 32], strides = [1, 1]} : vector<5x32xf32> to vector<1x32xf32>
    %8 = vector.broadcast %6 : vector<8x1xf32> to vector<8x32xf32>
    %9 = vector.broadcast %7 : vector<1x32xf32> to vector<8x32xf32>
    %10 = arith.mulf %8, %9 : vector<8x32xf32>
    %11 = arith.addf %3, %10 : vector<8x32xf32>
    %c0_6 = arith.constant 0 : index
    %c0_7 = arith.constant 0 : index
    %12 = vector.load %arg3[%c0_6, %c0_7] : memref<8x2xf32, #tpu.memory_space<vmem>>, vector<8x2xf32>
    %13 = vector.extract_strided_slice %0 {offsets = [3, 0], sizes = [2, 32], strides = [1, 1]} : vector<5x32xf32> to vector<2x32xf32>
    %cst_8 = arith.constant dense<0.000000e+00> : vector<8x32xf32>
    %14 = tpu.matmul %12, %13, %cst_8 {dimension_numbers = #tpu.dot_dimension_numbers<[1], [0], [0], [1], [0, 0, 1, 1], [], []>} : vector<8x2xf32>, vector<2x32xf32>, vector<8x32xf32> -> vector<8x32xf32>
    %15 = arith.addf %11, %14 : vector<8x32xf32>
    %c0_9 = arith.constant 0 : index
    %c0_10 = arith.constant 0 : index
    %16 = vector.load %arg5[%c0_9, %c0_10] : memref<1x32xf32, #tpu.memory_space<vmem>>, vector<1x32xf32>
    %17 = vector.broadcast %16 : vector<1x32xf32> to vector<8x32xf32>
    %18 = arith.addf %15, %17 : vector<8x32xf32>
    %19 = math.tanh %18 : vector<8x32xf32>
    %c0_11 = arith.constant 0 : index
    %c0_12 = arith.constant 0 : index
    %20 = vector.load %arg6[%c0_11, %c0_12] : memref<32x32xf32, #tpu.memory_space<vmem>>, vector<32x32xf32>
    %cst_13 = arith.constant dense<0.000000e+00> : vector<8x32xf32>
    %21 = tpu.matmul %19, %20, %cst_13 {dimension_numbers = #tpu.dot_dimension_numbers<[1], [0], [0], [1], [0, 0, 1, 1], [], []>} : vector<8x32xf32>, vector<32x32xf32>, vector<8x32xf32> -> vector<8x32xf32>
    %c0_14 = arith.constant 0 : index
    %c0_15 = arith.constant 0 : index
    %22 = vector.load %arg7[%c0_14, %c0_15] : memref<1x32xf32, #tpu.memory_space<vmem>>, vector<1x32xf32>
    %23 = vector.broadcast %22 : vector<1x32xf32> to vector<8x32xf32>
    %24 = arith.addf %21, %23 : vector<8x32xf32>
    %25 = math.tanh %24 : vector<8x32xf32>
    %c0_16 = arith.constant 0 : index
    %c0_17 = arith.constant 0 : index
    %26 = vector.load %arg8[%c0_16, %c0_17] : memref<32x32xf32, #tpu.memory_space<vmem>>, vector<32x32xf32>
    %cst_18 = arith.constant dense<0.000000e+00> : vector<8x32xf32>
    %27 = tpu.matmul %25, %26, %cst_18 {dimension_numbers = #tpu.dot_dimension_numbers<[1], [0], [0], [1], [0, 0, 1, 1], [], []>} : vector<8x32xf32>, vector<32x32xf32>, vector<8x32xf32> -> vector<8x32xf32>
    %c0_19 = arith.constant 0 : index
    %c0_20 = arith.constant 0 : index
    %28 = vector.load %arg9[%c0_19, %c0_20] : memref<1x32xf32, #tpu.memory_space<vmem>>, vector<1x32xf32>
    %29 = vector.broadcast %28 : vector<1x32xf32> to vector<8x32xf32>
    %30 = arith.addf %27, %29 : vector<8x32xf32>
    %31 = math.tanh %30 : vector<8x32xf32>
    %c0_21 = arith.constant 0 : index
    %c0_22 = arith.constant 0 : index
    %32 = vector.load %arg10[%c0_21, %c0_22] : memref<32x2xf32, #tpu.memory_space<vmem>>, vector<32x2xf32>
    %cst_23 = arith.constant dense<0.000000e+00> : vector<8x2xf32>
    %33 = tpu.matmul %31, %32, %cst_23 {dimension_numbers = #tpu.dot_dimension_numbers<[1], [0], [0], [1], [0, 0, 1, 1], [], []>} : vector<8x32xf32>, vector<32x2xf32>, vector<8x2xf32> -> vector<8x2xf32>
    %c0_24 = arith.constant 0 : index
    %c0_25 = arith.constant 0 : index
    %34 = vector.load %arg11[%c0_24, %c0_25] : memref<1x2xf32, #tpu.memory_space<vmem>>, vector<1x2xf32>
    %35 = vector.broadcast %34 : vector<1x2xf32> to vector<8x2xf32>
    %36 = arith.addf %33, %35 : vector<8x2xf32>
    %c0_26 = arith.constant 0 : index
    %c0_27 = arith.constant 0 : index
    %37 = vector.load %arg12[%c0_26, %c0_27] : memref<8x2xf32, #tpu.memory_space<vmem>>, vector<8x2xf32>
    tpu.vector_store %arg12[%c0_26, %c0_27], %36 {strides = array<i32>} : memref<8x2xf32, #tpu.memory_space<vmem>>, vector<8x2xf32>,
    return
  }
  func.func @transform_0(%arg0: i32) -> (i32, i32) {
    %c0_i32 = arith.constant 0 : i32
    %c0_i32_0 = arith.constant 0 : i32
    return %arg0, %c0_i32 : i32, i32
  }
  func.func @transform_1(%arg0: i32) -> (i32, i32) {
    %c0_i32 = arith.constant 0 : i32
    %c0_i32_0 = arith.constant 0 : i32
    return %arg0, %c0_i32 : i32, i32
  }
  func.func @transform_2(%arg0: i32) -> (i32, i32) {
    %c0_i32 = arith.constant 0 : i32
    %c0_i32_0 = arith.constant 0 : i32
    return %arg0, %c0_i32 : i32, i32
  }
  func.func @transform_3(%arg0: i32) -> (i32, i32) {
    %c0_i32 = arith.constant 0 : i32
    %c0_i32_0 = arith.constant 0 : i32
    %c0_i32_1 = arith.constant 0 : i32
    return %c0_i32, %c0_i32_0 : i32, i32
  }
  func.func @transform_4(%arg0: i32) -> (i32, i32) {
    %c0_i32 = arith.constant 0 : i32
    %c0_i32_0 = arith.constant 0 : i32
    %c0_i32_1 = arith.constant 0 : i32
    return %c0_i32, %c0_i32_0 : i32, i32
  }
  func.func @transform_5(%arg0: i32) -> (i32, i32) {
    %c0_i32 = arith.constant 0 : i32
    %c0_i32_0 = arith.constant 0 : i32
    %c0_i32_1 = arith.constant 0 : i32
    return %c0_i32, %c0_i32_0 : i32, i32
  }
  func.func @transform_6(%arg0: i32) -> (i32, i32) {
    %c0_i32 = arith.constant 0 : i32
    %c0_i32_0 = arith.constant 0 : i32
    %c0_i32_1 = arith.constant 0 : i32
    return %c0_i32, %c0_i32_0 : i32, i32
  }
  func.func @transform_7(%arg0: i32) -> (i32, i32) {
    %c0_i32 = arith.constant 0 : i32
    %c0_i32_0 = arith.constant 0 : i32
    %c0_i32_1 = arith.constant 0 : i32
    return %c0_i32, %c0_i32_0 : i32, i32
  }
  func.func @transform_8(%arg0: i32) -> (i32, i32) {
    %c0_i32 = arith.constant 0 : i32
    %c0_i32_0 = arith.constant 0 : i32
    %c0_i32_1 = arith.constant 0 : i32
    return %c0_i32, %c0_i32_0 : i32, i32
  }
  func.func @transform_9(%arg0: i32) -> (i32, i32) {
    %c0_i32 = arith.constant 0 : i32
    %c0_i32_0 = arith.constant 0 : i32
    %c0_i32_1 = arith.constant 0 : i32
    return %c0_i32, %c0_i32_0 : i32, i32
  }
  func.func @transform_10(%arg0: i32) -> (i32, i32) {
    %c0_i32 = arith.constant 0 : i32
    %c0_i32_0 = arith.constant 0 : i32
    %c0_i32_1 = arith.constant 0 : i32
    return %c0_i32, %c0_i32_0 : i32, i32
  }
  func.func @transform_11(%arg0: i32) -> (i32, i32) {
    %c0_i32 = arith.constant 0 : i32
    %c0_i32_0 = arith.constant 0 : i32
    return %arg0, %c0_i32 : i32, i32
  }
}

</mosaic_0001>

<bundles_post_ra>
// kernel: tpu_custom_call.1
= control target key start
LH: loop header
LB: loop body
LE: loop exit
PB: predicated region body
PF: predicated region fallthrough
CT: control target
= control target key end

     0   :  { %vm56_vm0 = vcmask 1041408   ;;  %vm52_vm1 = vcmask 15360   ;;  %v579_v0 = vmov 0.0   ;;  %vm580_vm2 = vmmov 0   ;;  %s719_s3 = inlined_call_operand.vmem [shape: f32[5,32], index: 3, kind: input, shape index: {}]   ;;  %s720_s0 = inlined_call_operand.vmem [shape: f32[8,2], index: 0, kind: input, shape index: {}]   ;;  %s721_s1 = inlined_call_operand.vmem [shape: f32[8,1], index: 1, kind: input, shape index: {}]   ;;  %s722_s2 = inlined_call_operand.vmem [shape: f32[8,2], index: 2, kind: input, shape index: {}]   ;;  %s723_s5 = inlined_call_operand.vmem [shape: f32[32,32], index: 5, kind: input, shape index: {}]   ;;  %s724_s4 = inlined_call_operand.vmem [shape: f32[1,32], index: 4, kind: input, shape index: {}]   ;;  %s725_s7 = inlined_call_operand.vmem [shape: f32[32,32], index: 7, kind: input, shape index: {}]   ;;  %s726_s6 = inlined_call_operand.vmem [shape: f32[1,32], index: 6, kind: input, shape index: {}]   ;;  %s727_s9 = inlined_call_operand.vmem [shape: f32[32,2], index: 9, kind: input, shape index: {}]   ;;  %s728_s8 = inlined_call_operand.vmem [shape: f32[1,32], index: 8, kind: input, shape index: {}]   ;;  %s729_s10 = inlined_call_operand.vmem [shape: f32[1,2], index: 10, kind: input, shape index: {}]   ;;  %s730_s11 = inlined_call_operand.vmem [shape: f32[8,2], index: 11, kind: output, shape index: {}]  }
   0x1   :  { %507 = vmatprep.subr.mxu1 %v579_v0  ;;  %v38_v1 = vld [vmem:[%s719_s3] sm:$0x1f]  ;;  %509 = vmatprep.mubr.msk.f32.mxu1 %vm580_vm2, %v579_v0  ;;  %v581_v4 = vmov 0   ;;  %v582_v8 = vmov 0.0|0.0   ;;  %v218_v10 = vld [vmem:[%s723_s5 + $0x8] sm:$0xff]  ;;  %v219_v11 = vld [vmem:[%s723_s5 + $0x10] sm:$0xff]  ;;  %v47_v15 = vlaneseq }
   0x2   :  { %v39_v2 = vld [vmem:[%s720_s0] sm:$0xff]  ;;  %508 = vmatpush3.msk.msra.mxu1 %vm56_vm0, %v38_v1  ;;  %v131_v3 = vrot.slane %v38_v1, 3  ;;  %572 = vset.pattern.permute.xlu0 %v581_v4  ;;  %v220_v13 = vld [vmem:[%s723_s5 + $0x18] sm:$0xff]  ;;  %vm228_vm3 = vcmask 261120   ;;  %v304_v31 = vld [vmem:[%s725_s7 + $0x8] sm:$0xff] }
   0x3   :  { %v40_v5 = vld [vmem:[%s721_s1] sm:$0xff]  ;;  %510 = vmatmul.mubr.msk.f32.vlgmr.msra.gmra.mrb[0].mxu1 %vm52_vm1, %v39_v2  ;;  %512 = vmatprep.subr.mxu1 %v579_v0  ;;  %v554_v14 = vpack.c.bf16 %v220_v13, %v219_v11  ;;  %v48_v16 = vshrl.u32 %v47_v15, 7  ;;  %v305_v32 = vld [vmem:[%s725_s7 + $0x10] sm:$0xff]  ;;  %v306_v34 = vld [vmem:[%s725_s7 + $0x18] sm:$0xff] }
   0x4   :  { %v41_v6 = vmul.f32 0.25, %v40_v5  ;;  %513 = vmatpush3.msk.msra.mxu1 %vm56_vm0, %v131_v3  ;;  %514 = vmatprep.mubr.msk.f32.mxu1 %vm580_vm2, %v579_v0  ;;  %v130_v7 = vld [vmem:[%s722_s2] sm:$0xff]  ;;  %v560_v35 = vpack.c.bf16 %v306_v34, %v305_v32  ;;  %v389_v42 = vld [vmem:[%s727_s9 + $0x8] sm:$0xff]  ;;  %v390_v43 = vld [vmem:[%s727_s9 + $0x10] sm:$0xff] }
   0x5   :  { %525 = vmatprep.mubr.msk.f32.mxu0 %vm580_vm2, %v579_v0  ;;  %550 = vmatprep.subr.bf16.mxu0 %v582_v8  ;;  %v217_v9 = vld [vmem:[%s723_s5] sm:$0xff]  ;;  %v49_v17 = vsub.s32 2, %v48_v16  ;;  %v391_v45 = vld [vmem:[%s727_s9 + $0x18] sm:$0xff] }
   0x6   :  { %44 = vperm.xlu0 %572, %v41_v6   ;;  %556 = vmatprep.subr.bf16.mxu1 %v582_v8  ;;  %v551_v12 = vpack.c.bf16 %v218_v10, %v217_v9  ;;  %v481_v25 = vld [vmem:[%s724_s4] ss:$0 sm:$0xff]  ;;  %v566_v46 = vpack.c.bf16 %v391_v45, %v390_v43 }
   0x7   :  { %515 = vmatmul.mubr.msk.f32.vlgmr.msra.gmra.mrb[2].mxu1 %vm52_vm1, %v130_v7  ;;  %v50_v18 = vrot.slane %v38_v1, %v49_v17  ;;  %v303_v30 = vld [vmem:[%s725_s7] sm:$0xff] }
   0x8   :  { %536 = vmatprep.mubr.msk.f32.mxu1 %vm580_vm2, %v579_v0  ;;  %552 = vmatpush3.bf16.msra.mxu0 %v551_v12  ;;  %v557_v33 = vpack.c.bf16 %v304_v31, %v303_v30  ;;  %v482_v36 = vld [vmem:[%s726_s6] ss:$0 sm:$0xff] }
   0x9   :  { %553 = vmatprep.subr.bf16.mxu0 %v582_v8  ;;  %v388_v41 = vld [vmem:[%s727_s9] sm:$0xff] }
   0xa   :  { %558 = vmatpush3.bf16.msra.mxu1 %v557_v33  ;;  %v563_v44 = vpack.c.bf16 %v389_v42, %v388_v41  ;;  %v484_v47 = vld [vmem:[%s728_s8] ss:$0 sm:$0xff] }
   0xb   :  { %559 = vmatprep.subr.bf16.mxu1 %v582_v8  ;;  %v486_v52 = vld [vmem:[%s729_s10] ss:$0 sm:$0xff] }
   0xc   :  { %555 = vmatpush3.bf16.msra.mxu0 %v554_v14 }
   0xd   :  { %562 = vmatprep.subr.bf16.mxu0 %v582_v8 }
   0xe   :  { %561 = vmatpush3.bf16.msra.mxu1 %v560_v35 }
  0x85   :  { %v45_v19 = vpop.permute.xlu0 %44 }
  0x86   :  { %v51_v20 = vmul.f32 %v50_v18, %v45_v19 }
  0xd6   :  { %v126_v21 = vpop.f32.mrb[0].mxu1 }
  0xd7   :  { %v127_v22 = vadd.f32 %v126_v21, %v51_v20  ;;  %v511_v23 = vpop.f32.mrb[1].mxu1 }
  0xda   :  { %v203_v24 = vpop.f32.mrb[2].mxu1 }
  0xdb   :  { %v207_v26 = vadd.f32 %v203_v24, %v127_v22  ;;  %v516_v27 = vpop.f32.mrb[3].mxu1 }
  0xdd   :  { %v215_v28 = vadd.f32 %v481_v25, %v207_v26 }
  0xdf   :  { %573 = vtanh.f32 %v215_v28 }
  0xe9   :  { %v574_v29 = vpop.eup %573 }
  0xea   :  { %526 = vmatmul.mubr.msk.f32.vlgmr.msra.gmra.mrb[0].mxu0 %vm228_vm3, %v574_v29 }
  0xeb   :  { %547 = vmatprep.mubr.msk.f32.mxu0 %vm580_vm2, %v579_v0  ;;  %564 = vmatpush3.bf16.msra.mxu0 %v563_v44 }
  0xec   :  { %565 = vmatprep.subr.bf16.mxu0 %v582_v8 }
  0xef   :  { %567 = vmatpush3.bf16.msra.mxu0 %v566_v46 }
 0x1bd   :  { %v298_v37 = vpop.f32.mrb[0].mxu0 }
 0x1be   :  { %v299_v38 = vadd.f32 %v482_v36, %v298_v37  ;;  %v527_v39 = vpop.f32.mrb[1].mxu0 }
 0x1c0   :  { %575 = vtanh.f32 %v299_v38 }
 0x1ca   :  { %v576_v40 = vpop.eup %575 }
 0x1cb   :  { %537 = vmatmul.mubr.msk.f32.vlgmr.msra.gmra.mrb[4].mxu1 %vm228_vm3, %v576_v40 }
 0x29e   :  { %v383_v48 = vpop.f32.mrb[4].mxu1 }
 0x29f   :  { %v384_v49 = vadd.f32 %v484_v47, %v383_v48  ;;  %v538_v50 = vpop.f32.mrb[5].mxu1 }
 0x2a1   :  { %577 = vtanh.f32 %v384_v49 }
 0x2ab   :  { %v578_v51 = vpop.eup %577 }
 0x2ac   :  { %548 = vmatmul.mubr.msk.f32.vlgmr.msra.gmra.mrb[2].mxu0 %vm228_vm3, %v578_v51 }
 0x37f   :  { %v468_v53 = vpop.f32.mrb[2].mxu0 }
 0x380   :  { %v469_v54 = vadd.f32 %v486_v52, %v468_v53  ;;  %v549_v55 = vpop.f32.mrb[3].mxu0 }
 0x382   :  { %472 = vst.msk [vmem:[%s730_s11] sm:$0xff] %vm52_vm1, %v469_v54 }

</bundles_post_ra>
